<compile_context>
chip_gen: v5e
topology: v5e:2x2
jax: 0.10.0
libtpu: 0.0.40
codegen_flags: <defaults>
</compile_context>

<pallas_src>
import math
from functools import partial

import jax
import jax.numpy as jnp
from jax import lax
from jax.experimental import pallas as pl
from jax.experimental.pallas import tpu as pltpu


def _round_up(x, m):
    return (x + m - 1) // m * m


def _maybe_single_buffered(block_shape, index_map, single):
    """Constant-index blocks don't need double buffering."""
    if single:
        try:
            return pl.BlockSpec(block_shape, index_map, pipeline_mode=pl.Buffered(1))
        except (TypeError, ValueError):
            pass
    return pl.BlockSpec(block_shape, index_map)


def _eq_conv2d_kernel(x_ref, w_ref, b_ref, o_ref, *, c, kH, kW, W_pad):
    """One (batch image, C_out-tile) grid step.

    x_ref: (1, C_in, Lp_in)    zero-padded, flattened (H_pad*W_pad) image, bf16
    w_ref: (kH*kW, tco, C_in)  per-tap weight slices (UNSCALED), bf16
    b_ref: (tco, 1)            bias, f32
    o_ref: (1, tco, Lp_out)    flat output tile (lane-dense, 128-aligned)
    """
    Lp_out = o_ref.shape[2]
    x = x_ref[0]                                           # (C_in, Lp_in), one full load

    # In-kernel im2col: each (kh, kw) tap is a STATIC lane shift of the
    # flattened padded image; accumulate kH*kW MXU dots in f32.
    acc = None
    for kh in range(kH):
        for kw in range(kW):
            r = kh * W_pad + kw
            win = x[:, r:r + Lp_out]                       # (C_in, Lp_out)
            tap = w_ref[kh * kW + kw]                      # (tco, C_in)
            part = jnp.dot(tap, win, preferred_element_type=jnp.float32)
            acc = part if acc is None else acc + part

    # Fused equalized-LR scale (compile-time immediate) + bias; single cast.
    o_ref[0] = (acc * c + b_ref[...]).astype(o_ref.dtype)


def equalized_conv2d(x, weight, bias, padding=0, *, compute_dtype=jnp.bfloat16):
    """out = conv2d(x, weight / sqrt(fan_in), bias, padding); NCHW / OIHW, stride=1."""
    N, C_in, H, W = x.shape
    C_out, C_in_w, kH, kW = weight.shape
    assert C_in == C_in_w, "in_channels mismatch"
    assert bias.shape == (C_out,)

    # Equalized-LR constant from the ORIGINAL 4D parameter shape (static Python float).
    c = 1.0 / math.sqrt(math.prod(weight.shape[1:]))

    H_pad, W_pad = H + 2 * padding, W + 2 * padding
    H_out, W_out = H_pad - kH + 1, W_pad - kW + 1
    assert H_out > 0 and W_out > 0

    # Flat spatial axis (row-major over the PADDED width).  A conv tap (kh, kw)
    # becomes a constant lane shift of kh*W_pad + kw; the kW-1 wrap-around
    # columns per row are computed but cropped off afterwards (cheap).
    Lp_out = _round_up(H_out * W_pad, 128)                 # lane-dense output extent
    max_shift = (kH - 1) * W_pad + (kW - 1)
    Lp_in = _round_up(Lp_out + max_shift, 128)             # covers every shifted window

    # ---- layout plumbing: all ~1x the input size (no 9x patch slab / transpose) ----
    x_pad = jnp.pad(x, ((0, 0), (0, 0), (padding, padding), (padding, padding)))
    x_flat = x_pad.reshape(N, C_in, H_pad * W_pad)
    x_flat = jnp.pad(x_flat, ((0, 0), (0, 0), (0, Lp_in - H_pad * W_pad)))
    x_flat = x_flat.astype(compute_dtype)                  # bf16 MXU operands

    # weight[o, i, kh, kw] -> (kH*kW, C_out, C_in), UNSCALED (scale fused in kernel)
    w_taps = weight.transpose(2, 3, 0, 1).reshape(kH * kW, C_out, C_in).astype(compute_dtype)
    b_col = bias.astype(jnp.float32).reshape(C_out, 1)

    out_dtype = x.dtype
    cbytes = jnp.dtype(compute_dtype).itemsize
    obytes = jnp.dtype(out_dtype).itemsize

    # ---- VMEM-aware C_out tile (output + f32 accumulator + weight slice per row) ----
    per_cout = Lp_out * (2 * obytes + 4) + kH * kW * C_in * cbytes + 8
    tco = C_out
    for d in range(C_out, 0, -1):
        if C_out % d or (d != C_out and d % 8):
            continue
        tco = d
        if d * per_cout <= (24 << 20):
            break
    n_co = C_out // tco

    # ---- scoped-VMEM budget: pipelined blocks (+ buffers) + kernel temporaries ----
    x_blk = C_in * Lp_in * cbytes
    w_blk = kH * kW * tco * C_in * cbytes
    o_blk = tco * Lp_out * obytes
    w_bufs = 1 if n_co == 1 else 2
    need = (2 * x_blk + w_bufs * w_blk + 2 * o_blk          # pipelined blocks
            + tco * Lp_out * 4                              # f32 accumulator
            + 3 * C_in * Lp_out * cbytes + x_blk)           # slice temporaries
    vmem_limit = int(min(max(need * 3 // 2 + (2 << 20), 32 << 20), 64 << 20))

    flops = 2 * N * C_out * C_in * kH * kW * H_out * W_out
    bytes_accessed = (x_flat.size * cbytes + w_taps.size * cbytes
                      + b_col.size * 4 + N * C_out * Lp_out * obytes)

    out_flat = pl.pallas_call(
        partial(_eq_conv2d_kernel, c=c, kH=kH, kW=kW, W_pad=W_pad),
        out_shape=jax.ShapeDtypeStruct((N, C_out, Lp_out), out_dtype),
        grid=(N, n_co),
        in_specs=[
            # Full (padded, flattened) image per batch element; resident across
            # the C_out-tile axis (block index does not depend on `co`).
            pl.BlockSpec((1, C_in, Lp_in), lambda n, co: (n, 0, 0)),
            # Weight taps / bias: constant across the grid when n_co == 1 ->
            # single-buffered (no duplicate VMEM copy).
            _maybe_single_buffered((kH * kW, tco, C_in), lambda n, co: (0, co, 0),
                                   single=(n_co == 1)),
            _maybe_single_buffered((tco, 1), lambda n, co: (co, 0),
                                   single=(n_co == 1)),
        ],
        out_specs=pl.BlockSpec((1, tco, Lp_out), lambda n, co: (n, co, 0)),
        compiler_params=pltpu.CompilerParams(
            dimension_semantics=("parallel", "parallel"),
            vmem_limit_bytes=vmem_limit,
        ),
        cost_estimate=pl.CostEstimate(flops=flops, transcendentals=0,
                                      bytes_accessed=bytes_accessed),
    )(x_flat, w_taps, b_col)

    # (N, C_out, Lp_out) -> crop the flat axis back to (H_out, W_out).
    out = out_flat[:, :, :H_out * W_pad].reshape(N, C_out, H_out, W_pad)
    return out[:, :, :, :W_out]


if __name__ == "__main__":
    key = jax.random.PRNGKey(0)
    k_x, k_w = jax.random.split(key)

    # Shapes consistent with EqualizedConv2d(in=4, out=8, kernel_size=3, padding=1)
    N, C_in, H, W = 2, 4, 16, 16
    C_out, ksize, padding = 8, 3, 1

    x = jax.random.normal(k_x, (N, C_in, H, W), dtype=jnp.float32)
    weight = jax.random.normal(k_w, (C_out, C_in, ksize, ksize), dtype=jnp.float32)
    bias = jnp.ones((C_out,), dtype=jnp.float32)       # nn.Parameter(torch.ones(out))

    out = equalized_conv2d(x, weight, bias, padding=padding)
    out = jax.block_until_ready(out)

    # References
    c_ref = 1.0 / math.sqrt(math.prod(weight.shape[1:]))
    dn = ("NCHW", "OIHW", "NCHW")
    pad2 = ((padding, padding), (padding, padding))

    # (a) matched operand rounding: same bf16-rounded inputs, f32 accumulation
    ref_bf16 = lax.conv_general_dilated(
        x.astype(jnp.bfloat16).astype(jnp.float32),
        weight.astype(jnp.bfloat16).astype(jnp.float32),
        (1, 1), pad2, dimension_numbers=dn, precision=lax.Precision.HIGHEST,
    ) * c_ref + bias.reshape(1, C_out, 1, 1)

    # (b) the original full-f32 PyTorch semantics (loose tol: bf16 MXU operands)
    ref_f32 = lax.conv_general_dilated(
        x, weight * c_ref, (1, 1), pad2, dimension_numbers=dn,
        precision=lax.Precision.HIGHEST,
    ) + bias.reshape(1, C_out, 1, 1)

    assert out.shape == (N, C_out, H, W) and out.dtype == jnp.float32
    assert bool(jnp.allclose(out, ref_bf16, atol=2e-3, rtol=2e-3))
    assert bool(jnp.allclose(out, ref_f32, atol=6e-2, rtol=6e-2))

    print("KERNEL_OK")
</pallas_src>

<mosaic_0001>
module attributes {stable_mosaic.version = 11 : i64} {
  func.func @_eq_conv2d_kernel(%arg0: i32, %arg1: i32, %arg2: memref<1x4x512xbf16, #tpu.memory_space<vmem>>, %arg3: memref<9x8x4xbf16, #tpu.memory_space<vmem>>, %arg4: memref<8x1xf32, #tpu.memory_space<vmem>>, %arg5: memref<1x8x384xf32, #tpu.memory_space<vmem>>) attributes {dimension_semantics = [#tpu.dimension_semantics<parallel>, #tpu.dimension_semantics<parallel>], iteration_bounds = array<i64: 2, 1>, scalar_prefetch = 0 : i64, scratch_operands = 0 : i64, tpu.core_type = #tpu.core_type<tc>, window_params = [{transform_indices = @transform_0, window_bounds = array<i64: 1, 4, 512>}, {pipeline_mode = #tpu.pipeline_mode<synchronous>, transform_indices = @transform_1, window_bounds = array<i64: 9, 8, 4>}, {pipeline_mode = #tpu.pipeline_mode<synchronous>, transform_indices = @transform_2, window_bounds = array<i64: 8, 1>}, {transform_indices = @transform_3, window_bounds = array<i64: 1, 8, 384>}]} {
    %c0 = arith.constant 0 : index
    %c0_0 = arith.constant 0 : index
    %c0_1 = arith.constant 0 : index
    %0 = vector.load %arg2[%c0, %c0_0, %c0_1] : memref<1x4x512xbf16, #tpu.memory_space<vmem>>, vector<1x4x512xbf16>
    %1 = vector.shape_cast %0 : vector<1x4x512xbf16> to vector<4x512xbf16>
    %2 = vector.extract_strided_slice %1 {offsets = [0, 0], sizes = [4, 384], strides = [1, 1]} : vector<4x512xbf16> to vector<4x384xbf16>
    %c0_2 = arith.constant 0 : index
    %c0_3 = arith.constant 0 : index
    %c0_4 = arith.constant 0 : index
    %3 = vector.load %arg3[%c0_2, %c0_3, %c0_4] : memref<9x8x4xbf16, #tpu.memory_space<vmem>>, vector<1x8x4xbf16>
    %4 = vector.shape_cast %3 : vector<1x8x4xbf16> to vector<8x4xbf16>
    %cst = arith.constant dense<0.000000e+00> : vector<8x384xf32>
    %5 = tpu.matmul %4, %2, %cst {dimension_numbers = #tpu.dot_dimension_numbers<[1], [0], [0], [1], [0, 0, 1, 1], [], []>} : vector<8x4xbf16>, vector<4x384xbf16>, vector<8x384xf32> -> vector<8x384xf32>
    %6 = vector.extract_strided_slice %1 {offsets = [0, 1], sizes = [4, 384], strides = [1, 1]} : vector<4x512xbf16> to vector<4x384xbf16>
    %c1 = arith.constant 1 : index
    %c0_5 = arith.constant 0 : index
    %c0_6 = arith.constant 0 : index
    %7 = vector.load %arg3[%c1, %c0_5, %c0_6] : memref<9x8x4xbf16, #tpu.memory_space<vmem>>, vector<1x8x4xbf16>
    %8 = vector.shape_cast %7 : vector<1x8x4xbf16> to vector<8x4xbf16>
    %cst_7 = arith.constant dense<0.000000e+00> : vector<8x384xf32>
    %9 = tpu.matmul %8, %6, %cst_7 {dimension_numbers = #tpu.dot_dimension_numbers<[1], [0], [0], [1], [0, 0, 1, 1], [], []>} : vector<8x4xbf16>, vector<4x384xbf16>, vector<8x384xf32> -> vector<8x384xf32>
    %10 = arith.addf %5, %9 : vector<8x384xf32>
    %11 = vector.extract_strided_slice %1 {offsets = [0, 2], sizes = [4, 384], strides = [1, 1]} : vector<4x512xbf16> to vector<4x384xbf16>
    %c2 = arith.constant 2 : index
    %c0_8 = arith.constant 0 : index
    %c0_9 = arith.constant 0 : index
    %12 = vector.load %arg3[%c2, %c0_8, %c0_9] : memref<9x8x4xbf16, #tpu.memory_space<vmem>>, vector<1x8x4xbf16>
    %13 = vector.shape_cast %12 : vector<1x8x4xbf16> to vector<8x4xbf16>
    %cst_10 = arith.constant dense<0.000000e+00> : vector<8x384xf32>
    %14 = tpu.matmul %13, %11, %cst_10 {dimension_numbers = #tpu.dot_dimension_numbers<[1], [0], [0], [1], [0, 0, 1, 1], [], []>} : vector<8x4xbf16>, vector<4x384xbf16>, vector<8x384xf32> -> vector<8x384xf32>
    %15 = arith.addf %10, %14 : vector<8x384xf32>
    %16 = vector.extract_strided_slice %1 {offsets = [0, 18], sizes = [4, 384], strides = [1, 1]} : vector<4x512xbf16> to vector<4x384xbf16>
    %c3 = arith.constant 3 : index
    %c0_11 = arith.constant 0 : index
    %c0_12 = arith.constant 0 : index
    %17 = vector.load %arg3[%c3, %c0_11, %c0_12] : memref<9x8x4xbf16, #tpu.memory_space<vmem>>, vector<1x8x4xbf16>
    %18 = vector.shape_cast %17 : vector<1x8x4xbf16> to vector<8x4xbf16>
    %cst_13 = arith.constant dense<0.000000e+00> : vector<8x384xf32>
    %19 = tpu.matmul %18, %16, %cst_13 {dimension_numbers = #tpu.dot_dimension_numbers<[1], [0], [0], [1], [0, 0, 1, 1], [], []>} : vector<8x4xbf16>, vector<4x384xbf16>, vector<8x384xf32> -> vector<8x384xf32>
    %20 = arith.addf %15, %19 : vector<8x384xf32>
    %21 = vector.extract_strided_slice %1 {offsets = [0, 19], sizes = [4, 384], strides = [1, 1]} : vector<4x512xbf16> to vector<4x384xbf16>
    %c4 = arith.constant 4 : index
    %c0_14 = arith.constant 0 : index
    %c0_15 = arith.constant 0 : index
    %22 = vector.load %arg3[%c4, %c0_14, %c0_15] : memref<9x8x4xbf16, #tpu.memory_space<vmem>>, vector<1x8x4xbf16>
    %23 = vector.shape_cast %22 : vector<1x8x4xbf16> to vector<8x4xbf16>
    %cst_16 = arith.constant dense<0.000000e+00> : vector<8x384xf32>
    %24 = tpu.matmul %23, %21, %cst_16 {dimension_numbers = #tpu.dot_dimension_numbers<[1], [0], [0], [1], [0, 0, 1, 1], [], []>} : vector<8x4xbf16>, vector<4x384xbf16>, vector<8x384xf32> -> vector<8x384xf32>
    %25 = arith.addf %20, %24 : vector<8x384xf32>
    %26 = vector.extract_strided_slice %1 {offsets = [0, 20], sizes = [4, 384], strides = [1, 1]} : vector<4x512xbf16> to vector<4x384xbf16>
    %c5 = arith.constant 5 : index
    %c0_17 = arith.constant 0 : index
    %c0_18 = arith.constant 0 : index
    %27 = vector.load %arg3[%c5, %c0_17, %c0_18] : memref<9x8x4xbf16, #tpu.memory_space<vmem>>, vector<1x8x4xbf16>
    %28 = vector.shape_cast %27 : vector<1x8x4xbf16> to vector<8x4xbf16>
    %cst_19 = arith.constant dense<0.000000e+00> : vector<8x384xf32>
    %29 = tpu.matmul %28, %26, %cst_19 {dimension_numbers = #tpu.dot_dimension_numbers<[1], [0], [0], [1], [0, 0, 1, 1], [], []>} : vector<8x4xbf16>, vector<4x384xbf16>, vector<8x384xf32> -> vector<8x384xf32>
    %30 = arith.addf %25, %29 : vector<8x384xf32>
    %31 = vector.extract_strided_slice %1 {offsets = [0, 36], sizes = [4, 384], strides = [1, 1]} : vector<4x512xbf16> to vector<4x384xbf16>
    %c6 = arith.constant 6 : index
    %c0_20 = arith.constant 0 : index
    %c0_21 = arith.constant 0 : index
    %32 = vector.load %arg3[%c6, %c0_20, %c0_21] : memref<9x8x4xbf16, #tpu.memory_space<vmem>>, vector<1x8x4xbf16>
    %33 = vector.shape_cast %32 : vector<1x8x4xbf16> to vector<8x4xbf16>
    %cst_22 = arith.constant dense<0.000000e+00> : vector<8x384xf32>
    %34 = tpu.matmul %33, %31, %cst_22 {dimension_numbers = #tpu.dot_dimension_numbers<[1], [0], [0], [1], [0, 0, 1, 1], [], []>} : vector<8x4xbf16>, vector<4x384xbf16>, vector<8x384xf32> -> vector<8x384xf32>
    %35 = arith.addf %30, %34 : vector<8x384xf32>
    %36 = vector.extract_strided_slice %1 {offsets = [0, 37], sizes = [4, 384], strides = [1, 1]} : vector<4x512xbf16> to vector<4x384xbf16>
    %c7 = arith.constant 7 : index
    %c0_23 = arith.constant 0 : index
    %c0_24 = arith.constant 0 : index
    %37 = vector.load %arg3[%c7, %c0_23, %c0_24] : memref<9x8x4xbf16, #tpu.memory_space<vmem>>, vector<1x8x4xbf16>
    %38 = vector.shape_cast %37 : vector<1x8x4xbf16> to vector<8x4xbf16>
    %cst_25 = arith.constant dense<0.000000e+00> : vector<8x384xf32>
    %39 = tpu.matmul %38, %36, %cst_25 {dimension_numbers = #tpu.dot_dimension_numbers<[1], [0], [0], [1], [0, 0, 1, 1], [], []>} : vector<8x4xbf16>, vector<4x384xbf16>, vector<8x384xf32> -> vector<8x384xf32>
    %40 = arith.addf %35, %39 : vector<8x384xf32>
    %41 = vector.extract_strided_slice %1 {offsets = [0, 38], sizes = [4, 384], strides = [1, 1]} : vector<4x512xbf16> to vector<4x384xbf16>
    %c8 = arith.constant 8 : index
    %c0_26 = arith.constant 0 : index
    %c0_27 = arith.constant 0 : index
    %42 = vector.load %arg3[%c8, %c0_26, %c0_27] : memref<9x8x4xbf16, #tpu.memory_space<vmem>>, vector<1x8x4xbf16>
    %43 = vector.shape_cast %42 : vector<1x8x4xbf16> to vector<8x4xbf16>
    %cst_28 = arith.constant dense<0.000000e+00> : vector<8x384xf32>
    %44 = tpu.matmul %43, %41, %cst_28 {dimension_numbers = #tpu.dot_dimension_numbers<[1], [0], [0], [1], [0, 0, 1, 1], [], []>} : vector<8x4xbf16>, vector<4x384xbf16>, vector<8x384xf32> -> vector<8x384xf32>
    %45 = arith.addf %40, %44 : vector<8x384xf32>
    %cst_29 = arith.constant 0.166666672 : f32
    %46 = vector.broadcast %cst_29 : f32 to vector<8x384xf32>
    %47 = arith.mulf %45, %46 : vector<8x384xf32>
    %c0_30 = arith.constant 0 : index
    %c0_31 = arith.constant 0 : index
    %48 = vector.load %arg4[%c0_30, %c0_31] : memref<8x1xf32, #tpu.memory_space<vmem>>, vector<8x1xf32>
    %49 = vector.broadcast %48 : vector<8x1xf32> to vector<8x384xf32>
    %50 = arith.addf %47, %49 : vector<8x384xf32>
    %c0_32 = arith.constant 0 : index
    %c0_33 = arith.constant 0 : index
    %c0_34 = arith.constant 0 : index
    %51 = vector.load %arg5[%c0_32, %c0_33, %c0_34] : memref<1x8x384xf32, #tpu.memory_space<vmem>>, vector<1x8x384xf32>
    %52 = vector.shape_cast %51 : vector<1x8x384xf32> to vector<8x384xf32>
    %53 = vector.shape_cast %50 : vector<8x384xf32> to vector<1x8x384xf32>
    tpu.vector_store %arg5[%c0_32, %c0_33, %c0_34], %53 {strides = array<i32>} : memref<1x8x384xf32, #tpu.memory_space<vmem>>, vector<1x8x384xf32>,
    return
  }
  func.func @transform_0(%arg0: i32, %arg1: i32) -> (i32, i32, i32) {
    %c0_i32 = arith.constant 0 : i32
    %c0_i32_0 = arith.constant 0 : i32
    %c0_i32_1 = arith.constant 0 : i32
    return %arg0, %c0_i32, %c0_i32_0 : i32, i32, i32
  }
  func.func @transform_1(%arg0: i32, %arg1: i32) -> (i32, i32, i32) {
    %c0_i32 = arith.constant 0 : i32
    %c0_i32_0 = arith.constant 0 : i32
    %c0_i32_1 = arith.constant 0 : i32
    return %c0_i32, %arg1, %c0_i32_0 : i32, i32, i32
  }
  func.func @transform_2(%arg0: i32, %arg1: i32) -> (i32, i32) {
    %c0_i32 = arith.constant 0 : i32
    %c0_i32_0 = arith.constant 0 : i32
    return %arg1, %c0_i32 : i32, i32
  }
  func.func @transform_3(%arg0: i32, %arg1: i32) -> (i32, i32, i32) {
    %c0_i32 = arith.constant 0 : i32
    %c0_i32_0 = arith.constant 0 : i32
    return %arg0, %arg1, %c0_i32 : i32, i32, i32
  }
}

</mosaic_0001>

<bundles_post_ra>
// kernel: tpu_custom_call.1
= control target key start
LH: loop header
LB: loop body
LE: loop exit
PB: predicated region body
PF: predicated region fallthrough
CT: control target
= control target key end

     0   :  { %8 = vsyncpa [#allocation3], 0  ;;  %s1467_s0 = inlined_call_operand.vmem [shape: bf16[2,4,512], index: 0, kind: input, shape index: {}]   ;;  %s1468_s1 = inlined_call_operand.vmem [shape: bf16[9,8,4], index: 1, kind: input, shape index: {}]   ;;  %s1469_s2 = inlined_call_operand.vmem [shape: f32[8,1], index: 2, kind: input, shape index: {}]   ;;  %s1470_s3 = inlined_call_operand.hbm [shape: f32[2,8,384], index: 3, kind: output, shape index: {}]  }
   0x1   :  { %10 = vsyncpa [#allocation3 + $0x1], 0  ;;  %s1247_s12 = smov 0   ;;  %s1249_s13 = smov 0  }
   0x2   :  { %s1251_s14 = smov 0   ;;  %s1253_s15 = smov 0  }
   0x3   :  { %s1255_s16 = smov 0   ;;  %s1257_s17 = smov 0  }
   0x4 LB: > { %s1022_s18 = sadd.s32 4294967295, %s1216_s17   ;;  %s1023_s19 = sadd.s32 4294967294, %s1216_s17   ;;  %s1216_s17 = sphi %s1257_s17, %s16_s17   ;;  %s1212_s16 = sphi %s1255_s16, %s1477_s16   ;;  %s1208_s15 = sphi %s1253_s15, %s1476_s15   ;;  %s1204_s14 = sphi %s1251_s14, %s1475_s14   ;;  %s1200_s13 = sphi %s1249_s13, %s1474_s13   ;;  %s1196_s12 = sphi %s1247_s12, %s1473_s12  }
   0x5   : > { %s28_s20 = sadd.s32 1, %s1212_s16  ;;  %s115_s21 = sadd.s32 1, %s1204_s14 }
   0x6   : > { %p30_p0 = scmp.ge.s32.totalorder %s28_s20, 2  ;;  %p125_p1 = scmp.ne.s32.totalorder %s1204_s14, %s1200_s13 }
   0x7   : > { %p126_p2 = scmp.eq.s32.totalorder %s1022_s18, 1  ;;  %p131_p3 = scmp.ne.s32.totalorder %s1200_s13, %s1196_s12 }
   0x8   : > { %s1479_s20 = smov (%p30_p0, %s28_s20), 0  ;;  %p132_p5 = scmp.eq.s32.totalorder %s1023_s19, 1 }
   0x9   : > { %p1287_p4 = por %p126_p2, %p125_p1  ;;  %s110_s23 = ssub.s32 %s1212_s16, %s1479_s20 }
   0xa   : > { %p1028_p6 = scmp.ge.s32.totalorder %s1216_s17, 1  ;;  %p113_p7 = scmp.eq.s32.totalorder %s110_s23, 0 }
   0xb   : > { %p1294_p8 = por %p132_p5, %p131_p3  ;;  %p172_p9 = scmp.lt.s32.totalorder %s1216_s17, 3 }
   0xc   : > { %s1300_s25 = scalar_select %p113_p7, %s1204_s14, %s115_s21  }
   0xd   : > { %p173_p10 = pnand %p1028_p6, %p172_p9 }
   0xe   : > { %p204_p11 = scmp.lt.s32.totalorder (!%p173_p10), %s1208_s15, 1  ;;  %s1218_s4 = smov (!%p173_p10), 127  }
   0xf   : > { %176 = sbr.rel (%p173_p10) target bundleno = 402 (0x192), region = 32  ;;  %s1219_s5 = smov (!%p173_p10), 126  }
  0x10   : > { %s1220_s6 = smov (!%p173_p10), 110   ;;  %s1221_s7 = smov (!%p173_p10), 109  }
  0x11   : > { %s1222_s8 = smov (!%p173_p10), 108   ;;  %s1223_s9 = smov (!%p173_p10), 92  }
  0x12   : > { %s1224_s10 = smov (!%p173_p10), 91   ;;  %s1225_s11 = smov (!%p173_p10), 90  }
  0x13   : > { %s201_s23 = sand.u32 (!%p173_p10), 1, %s1200_s13  }
  0x14   : > { %s205_s26 = scalar_select %p204_p11, %s1208_s15, 1  ;;  %vm248_vm0 = vcmask 1041408   ;;  %v219_v37 = vld [vmem:[%s1468_s1] sm:$0xf]  ;;  %vm244_vm1 = vcmask 31744   ;;  %vm368_vm2 = vcmask 1031168  }
  0x15   : > { %vm240_vm3 = vcmask 1039360   ;;  %v1031_v54 = vld [vmem:[%s1468_s1 + $0x4] sm:$0xf]  ;;  %vm445_vm4 = vcmask 900096   ;;  %v1038_v61 = vld [vmem:[%s1468_s1 + $0x8] sm:$0xf] }
  0x16   : > { %s1069_s27 = sshll.u32 %s205_s26, 3  ;;  %vm522_vm5 = vcmask 891904   ;;  %vm599_vm6 = vcmask 883712   ;;  %vm676_vm7 = vcmask 752640   ;;  %vm753_vm8 = vcmask 744448   ;;  %s1070_s26 = smul.u32 24, %s201_s23 }
  0x17   : > { %s208_s30 = scalar_lea.vmem %s1467_s0, %s1069_s27  ;;  %vm830_vm9 = vcmask 736256   ;;  %s1071_s27 = smul.u32 24, %s1208_s15 }
  0x18   : > { %v1307_v0 = vld [vmem:[%s208_s30] sm:$0xff] }
  0x19   : > { %223 = vst [vmem:[#allocation1] ss:$4 sm:$0xff] %v1307_v0  ;;  %s917_s30 = scalar_lea.hbm %s1470_s3, %s1071_s27 }
  0x1a   : > { %s921_s15 = sshll.u32 %s917_s30, 4  ;;  %s922_s15 = int_to_ptr.hbm [resolvable:$true] %s921_s15 }
  0x20   : > { %v228_v1 = vld.sshfl [vmem:[#allocation1 + $0x10] sm:$0xff pattern:$0x73625140]  ;;  %v224_v2 = vld.sshfl [vmem:[#allocation1] sm:$0xff pattern:$0x73625140] }
  0x21   : > { %236 = vrot.lane.b32.xlu0 %v228_v1, %s1218_s4  ;;  %232 = vrot.lane.b32.xlu1 %v224_v2, %s1218_s4  ;;  %v230_v3 = vld.sshfl [vmem:[#allocation1 + $0x18] sm:$0xff pattern:$0x73625140]  ;;  %v226_v4 = vld.sshfl [vmem:[#allocation1 + $0x8] sm:$0xff pattern:$0x73625140] }
  0x22   : > { %297 = vst [vmem:[#allocation1] ss:$4 sm:$0xff] %v1307_v0 }
  0x29   : > { %238 = vrot.lane.b32.xlu0 %v230_v3, %s1218_s4  ;;  %234 = vrot.lane.b32.xlu1 %v226_v4, %s1218_s4  ;;  %v1311_v5 = vld.sshfl [vmem:[#allocation1] sm:$0xff pattern:$0x73625140]  ;;  %v1313_v6 = vld.sshfl [vmem:[#allocation1 + $0x8] sm:$0xff pattern:$0x73625140] }
  0x2a   : > { %v1315_v7 = vld.sshfl [vmem:[#allocation1 + $0x10] sm:$0xff pattern:$0x73625140]  ;;  %v304_v34 = vsel %vm248_vm0, %v1311_v5, 0  ;;  %v306_v45 = vsel %vm248_vm0, %v1313_v6, 0  ;;  %s203_s4 = scalar_lea.vmem [#allocation2], %s1070_s26 }
  0x2b   : > { %351 = vst [vmem:[#allocation1] ss:$4 sm:$0xff] %v1307_v0  ;;  %317 = vmatpush.bf16.msra.mxu3 %v304_v34  ;;  %v308_v49 = vsel %vm248_vm0, %v1315_v7, 0 }
  0x2e   : > { %1035 = vmatmul.msk.bf16.vlgmr.msra.gmra.mxu3 %vm244_vm1, %v219_v37 }
  0x32   : > { %v354_v8 = vld.sshfl [vmem:[#allocation1 + $0x8] sm:$0xff pattern:$0x73625140]  ;;  %v358_v9 = vld.sshfl [vmem:[#allocation1 + $0x18] sm:$0xff pattern:$0x73625140] }
  0x33   : > { %v356_v10 = vld.sshfl [vmem:[#allocation1 + $0x10] sm:$0xff pattern:$0x73625140]  ;;  %v352_v11 = vld.sshfl [vmem:[#allocation1] sm:$0xff pattern:$0x73625140] }
  0x34   : > { %364 = vrot.lane.b32.xlu0 %v356_v10, %s1219_s5  ;;  %360 = vrot.lane.b32.xlu2 %v352_v11, %s1219_s5  ;;  %428 = vst [vmem:[#allocation1] ss:$4 sm:$0xff] %v1307_v0  ;;  %v1042_v11 = vld [vmem:[%s1468_s1 + $0xc] sm:$0xf] }
  0x3b   : > { %v431_v12 = vld.sshfl [vmem:[#allocation1 + $0x8] sm:$0xff pattern:$0x73625140]  ;;  %v433_v13 = vld.sshfl [vmem:[#allocation1 + $0x10] sm:$0xff pattern:$0x73625140] }
  0x3c   : > { %v435_v14 = vld.sshfl [vmem:[#allocation1 + $0x18] sm:$0xff pattern:$0x73625140]  ;;  %439 = vrot.lane.b32.xlu1 %v431_v12, %s1220_s6  ;;  %366 = vrot.lane.b32.xlu0 %v358_v9, %s1219_s5  ;;  %v429_v15 = vld.sshfl [vmem:[#allocation1] sm:$0xff pattern:$0x73625140] }
  0x3d   : > { %362 = vrot.lane.b32.xlu2 %v354_v8, %s1219_s5  ;;  %505 = vst [vmem:[#allocation1] ss:$4 sm:$0xff] %v1307_v0  ;;  %s919_s5 = sshll.u32 %s203_s4, 4  ;;  %s920_s5 = int_to_ptr.vmem [resolvable:$true] %s919_s5 }
  0x44   : > { %437 = vrot.lane.b32.xlu1 %v429_v15, %s1220_s6  ;;  %v510_v16 = vld.sshfl [vmem:[#allocation1 + $0x10] sm:$0xff pattern:$0x73625140]  ;;  %v506_v17 = vld.sshfl [vmem:[#allocation1] sm:$0xff pattern:$0x73625140] }
  0x45   : > { %518 = vrot.lane.b32.xlu0 %v510_v16, %s1221_s7  ;;  %v512_v18 = vld.sshfl [vmem:[#allocation1 + $0x18] sm:$0xff pattern:$0x73625140]  ;;  %v508_v19 = vld.sshfl [vmem:[#allocation1 + $0x8] sm:$0xff pattern:$0x73625140]  ;;  %441 = vrot.lane.b32.xlu2 %v433_v13, %s1220_s6 }
  0x46   : > { %582 = vst [vmem:[#allocation1] ss:$4 sm:$0xff] %v1307_v0 }
  0x4c   : > { %520 = vrot.lane.b32.xlu1 %v512_v18, %s1221_s7 }
  0x4d   : > { %516 = vrot.lane.b32.xlu0 %v508_v19, %s1221_s7  ;;  %v585_v20 = vld.sshfl [vmem:[#allocation1 + $0x8] sm:$0xff pattern:$0x73625140]  ;;  %v587_v21 = vld.sshfl [vmem:[#allocation1 + $0x10] sm:$0xff pattern:$0x73625140]  ;;  %443 = vrot.lane.b32.xlu2 %v435_v14, %s1220_s6 }
  0x4e   : > { %v589_v22 = vld.sshfl [vmem:[#allocation1 + $0x18] sm:$0xff pattern:$0x73625140]  ;;  %v583_v23 = vld.sshfl [vmem:[#allocation1] sm:$0xff pattern:$0x73625140] }
  0x4f   : > { %659 = vst [vmem:[#allocation1] ss:$4 sm:$0xff] %v1307_v0  ;;  %s904_s6 = scalar_lea.sflag [#allocation3], %s201_s23 }
  0x54   : > { %591 = vrot.lane.b32.xlu1 %v583_v23, %s1222_s8 }
  0x55   : > { %514 = vrot.lane.b32.xlu2 %v506_v17, %s1221_s7  ;;  %s1152_s7 = sshra.s32 %s922_s15, 4  ;;  %s1153_s7 = int_to_ptr.hbm [resolvable:$true] %s1152_s7 }
  0x56   : > { %v666_v24 = vld.sshfl [vmem:[#allocation1 + $0x18] sm:$0xff pattern:$0x73625140]  ;;  %v660_v25 = vld.sshfl [vmem:[#allocation1] sm:$0xff pattern:$0x73625140]  ;;  %p1159_p1 = scmp.lt.s32.totalorder %s1153_s7, %s1470_s3 }
  0x57   : > { %668 = vrot.lane.b32.xlu0 %v660_v25, %s1223_s9  ;;  %v662_v26 = vld.sshfl [vmem:[#allocation1 + $0x8] sm:$0xff pattern:$0x73625140]  ;;  %v664_v27 = vld.sshfl [vmem:[#allocation1 + $0x10] sm:$0xff pattern:$0x73625140] }
  0x58   : > { %736 = vst [vmem:[#allocation1] ss:$4 sm:$0xff] %v1307_v0 }
  0x5c   : > { %670 = vrot.lane.b32.xlu1 %v662_v26, %s1223_s9 }
  0x5d   : > { %593 = vrot.lane.b32.xlu2 %v585_v20, %s1222_s8 }
  0x5f   : > { %597 = vrot.lane.b32.xlu0 %v589_v22, %s1222_s8  ;;  %v737_v28 = vld.sshfl [vmem:[#allocation1] sm:$0xff pattern:$0x73625140]  ;;  %v739_v29 = vld.sshfl [vmem:[#allocation1 + $0x8] sm:$0xff pattern:$0x73625140] }
  0x60   : > { %v741_v30 = vld.sshfl [vmem:[#allocation1 + $0x10] sm:$0xff pattern:$0x73625140]  ;;  %v743_v31 = vld.sshfl [vmem:[#allocation1 + $0x18] sm:$0xff pattern:$0x73625140] }
  0x61   : > { %813 = vst [vmem:[#allocation1] ss:$4 sm:$0xff] %v1307_v0 }
  0x64   : > { %672 = vrot.lane.b32.xlu1 %v664_v27, %s1223_s9 }
  0x65   : > { %595 = vrot.lane.b32.xlu2 %v587_v21, %s1222_s8  ;;  %s1154_s8 = scalar_lea.hbm %s1153_s7, 24 }
  0x66   : > { %p1155_p12 = scmp.ne.s32.totalorder %s1153_s7, %s1154_s8 }
  0x67   : > { %749 = vrot.lane.b32.xlu0 %v741_v30, %s1224_s10 }
  0x68   : > { %v818_v32 = vld.sshfl [vmem:[#allocation1 + $0x10] sm:$0xff pattern:$0x73625140]  ;;  %v814_v33 = vld.sshfl [vmem:[#allocation1] sm:$0xff pattern:$0x73625140]  ;;  %p1156_p13 = pnand %p1155_p12, %p1287_p4 }
  0x69   : > { %v816_v35 = vld.sshfl [vmem:[#allocation1 + $0x8] sm:$0xff pattern:$0x73625140]  ;;  %v820_v36 = vld.sshfl [vmem:[#allocation1 + $0x18] sm:$0xff pattern:$0x73625140] }
  0x6a   : > { %p1157_p0 = pneg %p1156_p13 }
  0x6c   : > { %674 = vrot.lane.b32.xlu1 %v666_v24, %s1223_s9 }
  0x6d   : > { %747 = vrot.lane.b32.xlu2 %v739_v29, %s1224_s10 }
  0x6f   : > { %751 = vrot.lane.b32.xlu0 %v743_v31, %s1224_s10  ;;  %v1046_v31 = vld [vmem:[%s1468_s1 + $0x10] sm:$0xf] }
  0x74   : > { %826 = vrot.lane.b32.xlu1 %v818_v32, %s1225_s11 }
  0x75   : > { %745 = vrot.lane.b32.xlu2 %v737_v28, %s1224_s10  ;;  %v1050_v28 = vld [vmem:[%s1468_s1 + $0x14] sm:$0xf] }
  0x77   : > { %822 = vrot.lane.b32.xlu0 %v814_v33, %s1225_s11 }
  0x7c   : > { %824 = vrot.lane.b32.xlu1 %v816_v35, %s1225_s11 }
  0x7d   : > { %828 = vrot.lane.b32.xlu2 %v820_v36, %s1225_s11  ;;  %s1158_s11 = scalar_lea.hbm %s1470_s3, 48 }
  0x7e   : > { %p1160_p2 = scmp.lt.s32.totalorder %s1158_s11, %s1154_s8 }
  0x80   : > { %p1161_p3 = por %p1160_p2, %p1159_p1 }
  0x82   : > { %p1162_p5 = pnand %p1161_p3, %p1157_p0 }
  0x8e   : > { %v361_v38 = vpop.permute.xlu2 %360 }
  0x93   : > { %v237_v39 = vpop.permute.xlu0 %236  ;;  %v233_v40 = vpop.permute.xlu1 %232 }
  0x97   : > { %v363_v41 = vpop.permute.xlu2 %362 }
  0x98   : > { %v369_v42 = vsel %vm368_vm2, %v361_v38, %v363_v41 }
  0x99   : > { %v376_v53 = vsel %vm248_vm0, %v369_v42, 0 }
  0x9b   : > { %v239_v43 = vpop.permute.xlu0 %238  ;;  %v235_v44 = vpop.permute.xlu1 %234 }
  0x9c   : > { %v241_v46 = vsel %vm240_vm3, %v233_v40, %v235_v44  ;;  %v242_v47 = vsel %vm240_vm3, %v235_v44, %v237_v39  ;;  %v243_v48 = vsel %vm240_vm3, %v237_v39, %v239_v43  ;;  %v1054_v43 = vld [vmem:[%s1468_s1 + $0x18] sm:$0xf] }
  0x9d   : > { %v250_v50 = vsel %vm248_vm0, %v241_v46, 0  ;;  %v253_v51 = vsel %vm248_vm0, %v242_v47, 0  ;;  %v256_v52 = vsel %vm248_vm0, %v243_v48, 0 }
  0x9e   : > { %265 = vmatpush.bf16.msra.mxu0 %v250_v50  ;;  %278 = vmatpush.bf16.msra.mxu1 %v253_v51 }
  0x9f   : > { %291 = vmatpush.bf16.msra.mxu2 %v256_v52  ;;  %v442_v55 = vpop.permute.xlu2 %441 }
  0xa1   : > { %1032 = vmatmul.msk.bf16.vlgmr.msra.gmra.mxu0 %vm244_vm1, %v1031_v54  ;;  %1033 = vmatmul.msk.bf16.vlgmr.msra.gmra.mxu1 %vm244_vm1, %v1031_v54 }
  0xa2   : > { %330 = vmatpush.bf16.msrb.mxu0 %v306_v45  ;;  %343 = vmatpush.bf16.msrb.mxu1 %v308_v49 }
  0xa3   : > { %391 = vmatpush.bf16.msrb.mxu2 %v376_v53 }
  0xa4   : > { %1034 = vmatmul.msk.bf16.vlgmr.msra.gmra.mxu2 %vm244_vm1, %v1031_v54 }
  0xa6   : > { %v365_v56 = vpop.permute.xlu0 %364 }
  0xa7   : > { %v370_v57 = vsel %vm368_vm2, %v363_v41, %v365_v56  ;;  %v444_v58 = vpop.permute.xlu2 %443 }
  0xa8   : > { %v379_v59 = vsel %vm248_vm0, %v370_v57, 0  ;;  %v448_v60 = vsel %vm445_vm4, %v442_v55, %v444_v58 }
  0xa9   : > { %404 = vmatpush.bf16.msrb.mxu3 %v379_v59  ;;  %v459_v62 = vsel %vm248_vm0, %v448_v60, 0 }
  0xac   : > { %1040 = vmatmul.msk.bf16.vlgmr.msrb.gmra.mxu3 %vm244_vm1, %v1038_v61 }
  0xad   : > { %494 = vmatpush.bf16.msra.mxu3 %v459_v62 }
  0xae   : > { %v440_v63 = vpop.permute.xlu1 %439  ;;  %v367_v0 = vpop.permute.xlu0 %366 }
  0xaf   : > { %v447_v1 = vsel %vm445_vm4, %v440_v63, %v442_v55  ;;  %v371_v2 = vsel %vm368_vm2, %v365_v56, %v367_v0  ;;  %v515_v3 = vpop.permute.xlu2 %514  ;;  %v1058_v56 = vld [vmem:[%s1468_s1 + $0x1c] sm:$0xf] }
  0xb0   : > { %v456_v4 = vsel %vm248_vm0, %v447_v1, 0  ;;  %v382_v5 = vsel %vm248_vm0, %v371_v2, 0  ;;  %v891_v1 = vld [vmem:[%s1469_s2] sm:$0xff]  ;;  %v1226_v2 = vmov 0  }
  0xb1   : > { %417 = vmatpush.bf16.msra.mxu0 %v382_v5  ;;  %481 = vmatpush.bf16.msra.mxu2 %v456_v4  ;;  %v319_v0 = vpop.f32.mrf.mxu3 }
  0xb2   : > { %1036 = vmatmul.msk.bf16.vlgmr.msrb.gmra.mxu0 %vm244_vm1, %v219_v37  ;;  %1037 = vmatmul.msk.bf16.vlgmr.msrb.gmra.mxu1 %vm244_vm1, %v219_v37 }
  0xb3   : > { %1136 = vset.pattern.permute.xlu2 %v1226_v2  ;;  %1137 = vset.pattern.permute.xlu0 %v1226_v2 }
  0xb4   : > { %1039 = vmatmul.msk.bf16.vlgmr.msrb.gmra.mxu2 %vm244_vm1, %v1038_v61  ;;  %894 = vperm.xlu2 %1136, %v891_v1  }
  0xb6   : > { %v438_v6 = vpop.permute.xlu1 %437 }
  0xb7   : > { %v446_v7 = vsel %vm445_vm4, %v438_v6, %v440_v63  ;;  %v519_v8 = vpop.permute.xlu0 %518  ;;  %v594_v9 = vpop.permute.xlu2 %593  ;;  %v1062_v63 = vld [vmem:[%s1468_s1 + $0x20] sm:$0xf] }
  0xb8   : > { %v453_v10 = vsel %vm248_vm0, %v446_v7, 0 }
  0xb9   : > { %468 = vmatpush.bf16.msra.mxu1 %v453_v10 }
  0xbc   : > { %1045 = vmatmul.msk.bf16.vlgmr.msra.gmra.mxu3 %vm244_vm1, %v1042_v11 }
  0xbe   : > { %v521_v12 = vpop.permute.xlu1 %520 }
  0xbf   : > { %v525_v13 = vsel %vm522_vm5, %v519_v8, %v521_v12  ;;  %v517_v14 = vpop.permute.xlu0 %516  ;;  %v596_v15 = vpop.permute.xlu2 %595 }
  0xc0   : > { %v536_v16 = vsel %vm248_vm0, %v525_v13, 0  ;;  %v524_v17 = vsel %vm522_vm5, %v517_v14, %v519_v8  ;;  %v523_v18 = vsel %vm522_vm5, %v515_v3, %v517_v14  ;;  %v601_v19 = vsel %vm599_vm6, %v594_v9, %v596_v15  ;;  %v321_v3 = vpop.f32.mrf.mxu3 }
  0xc1   : > { %v533_v20 = vsel %vm248_vm0, %v524_v17, 0  ;;  %v530_v21 = vsel %vm248_vm0, %v523_v18, 0  ;;  %571 = vmatpush.bf16.msrb.mxu2 %v536_v16  ;;  %v610_v22 = vsel %vm248_vm0, %v601_v19, 0 }
  0xc2   : > { %558 = vmatpush.bf16.msrb.mxu1 %v533_v20  ;;  %1041 = vmatmul.msk.bf16.vlgmr.msra.gmra.mxu0 %vm244_vm1, %v1038_v61 }
  0xc3   : > { %1043 = vmatmul.msk.bf16.vlgmr.msra.gmra.mxu1 %vm244_vm1, %v1042_v11  ;;  %545 = vmatpush.bf16.msrb.mxu0 %v530_v21 }
  0xc4   : > { %1044 = vmatmul.msk.bf16.vlgmr.msra.gmra.mxu2 %vm244_vm1, %v1042_v11 }
  0xc6   : > { %v592_v23 = vpop.permute.xlu1 %591 }
  0xc7   : > { %635 = vmatpush.bf16.msra.mxu0 %v610_v22  ;;  %v600_v24 = vsel %vm599_vm6, %v592_v23, %v594_v9  ;;  %v748_v25 = vpop.permute.xlu2 %747 }
  0xc8   : > { %v607_v26 = vsel %vm248_vm0, %v600_v24, 0 }
  0xc9   : > { %v669_v27 = vpop.permute.xlu0 %668  ;;  %622 = vmatpush.bf16.msrb.mxu3 %v607_v26 }
  0xcc   : > { %1051 = vmatmul.msk.bf16.vlgmr.msrb.gmra.mxu3 %vm244_vm1, %v1050_v28 }
  0xce   : > { %v671_v29 = vpop.permute.xlu1 %670 }
  0xcf   : > { %v677_v30 = vsel %vm676_vm7, %v669_v27, %v671_v29  ;;  %v746_v32 = vpop.permute.xlu2 %745 }
  0xd0   : > { %v684_v33 = vsel %vm248_vm0, %v677_v30, 0  ;;  %v754_v34 = vsel %vm753_vm8, %v746_v32, %v748_v25 }
  0xd1   : > { %v598_v35 = vpop.permute.xlu0 %597  ;;  %699 = vmatpush.bf16.msra.mxu2 %v684_v33  ;;  %v761_v37 = vsel %vm248_vm0, %v754_v34, 0 }
  0xd2   : > { %v602_v36 = vsel %vm599_vm6, %v596_v15, %v598_v35  ;;  %1047 = vmatmul.msk.bf16.vlgmr.msrb.gmra.mxu0 %vm244_vm1, %v1046_v31 }
  0xd3   : > { %v613_v38 = vsel %vm248_vm0, %v602_v36, 0  ;;  %1048 = vmatmul.msk.bf16.vlgmr.msrb.gmra.mxu1 %vm244_vm1, %v1046_v31 }
  0xd4   : > { %1049 = vmatmul.msk.bf16.vlgmr.msrb.gmra.mxu2 %vm244_vm1, %v1046_v31  ;;  %648 = vmatpush.bf16.msra.mxu1 %v613_v38 }
  0xd6   : > { %v673_v39 = vpop.permute.xlu1 %672 }
  0xd7   : > { %v678_v40 = vsel %vm676_vm7, %v671_v29, %v673_v39  ;;  %v829_v52 = vpop.permute.xlu2 %828 }
  0xd8   : > { %776 = vmatpush.bf16.msrb.mxu1 %v761_v37  ;;  %v687_v41 = vsel %vm248_vm0, %v678_v40, 0 }
  0xd9   : > { %v750_v42 = vpop.permute.xlu0 %749  ;;  %712 = vmatpush.bf16.msra.mxu3 %v687_v41 }
  0xda   : > { %v755_v44 = vsel %vm753_vm8, %v748_v25, %v750_v42 }
  0xdb   : > { %v764_v45 = vsel %vm248_vm0, %v755_v44, 0 }
  0xdc   : > { %1056 = vmatmul.msk.bf16.vlgmr.msra.gmra.mxu3 %vm244_vm1, %v1054_v43  ;;  %789 = vmatpush.bf16.msrb.mxu2 %v764_v45 }
  0xde   : > { %v675_v46 = vpop.permute.xlu1 %674 }
  0xdf   : > { %v679_v47 = vsel %vm676_vm7, %v673_v39, %v675_v46 }
  0xe0   : > { %v690_v48 = vsel %vm248_vm0, %v679_v47, 0 }
  0xe1   : > { %v752_v49 = vpop.permute.xlu0 %751  ;;  %725 = vmatpush.bf16.msrb.mxu0 %v690_v48 }
  0xe2   : > { %v756_v50 = vsel %vm753_vm8, %v750_v42, %v752_v49  ;;  %1052 = vmatmul.msk.bf16.vlgmr.msra.gmra.mxu0 %vm244_vm1, %v1050_v28 }
  0xe3   : > { %v767_v51 = vsel %vm248_vm0, %v756_v50, 0  ;;  %1053 = vmatmul.msk.bf16.vlgmr.msra.gmra.mxu1 %vm244_vm1, %v1050_v28 }
  0xe4   : > { %1055 = vmatmul.msk.bf16.vlgmr.msra.gmra.mxu2 %vm244_vm1, %v1054_v43  ;;  %802 = vmatpush.bf16.msrb.mxu3 %v767_v51 }
  0xe6   : > { %v827_v53 = vpop.permute.xlu1 %826 }
  0xe7   : > { %v833_v54 = vsel %vm830_vm9, %v827_v53, %v829_v52 }
  0xe8   : > { %v844_v55 = vsel %vm248_vm0, %v833_v54, 0 }
  0xe9   : > { %879 = vmatpush.bf16.msra.mxu2 %v844_v55  ;;  %v823_v57 = vpop.permute.xlu0 %822 }
  0xec   : > { %1061 = vmatmul.msk.bf16.vlgmr.msrb.gmra.mxu3 %vm244_vm1, %v1058_v56 }
  0xee   : > { %v825_v58 = vpop.permute.xlu1 %824 }
  0xef   : > { %v832_v59 = vsel %vm830_vm9, %v825_v58, %v827_v53  ;;  %v831_v60 = vsel %vm830_vm9, %v823_v57, %v825_v58 }
  0xf0   : > { %v841_v61 = vsel %vm248_vm0, %v832_v59, 0  ;;  %v838_v62 = vsel %vm248_vm0, %v831_v60, 0 }
  0xf1   : > { %866 = vmatpush.bf16.msra.mxu1 %v841_v61  ;;  %853 = vmatpush.bf16.msra.mxu0 %v838_v62 }
  0xf2   : > { %1057 = vmatmul.msk.bf16.vlgmr.msrb.gmra.mxu0 %vm244_vm1, %v1054_v43 }
  0xf3   : > { %1059 = vmatmul.msk.bf16.vlgmr.msrb.gmra.mxu1 %vm244_vm1, %v1058_v56 }
  0xf4   : > { %1060 = vmatmul.msk.bf16.vlgmr.msrb.gmra.mxu2 %vm244_vm1, %v1058_v56 }
 0x102   : > { %1063 = vmatmul.msk.bf16.vlgmr.msra.gmra.mxu0 %vm244_vm1, %v1062_v63 }
 0x103   : > { %1064 = vmatmul.msk.bf16.vlgmr.msra.gmra.mxu1 %vm244_vm1, %v1062_v63 }
 0x104   : > { %1065 = vmatmul.msk.bf16.vlgmr.msra.gmra.mxu2 %vm244_vm1, %v1062_v63 }
 0x11e   : > { %v267_v4 = vpop.f32.mrf.mxu0  ;;  %v280_v5 = vpop.f32.mrf.mxu1 }
 0x11f   : > { %v320_v6 = vadd.f32 %v319_v0, %v267_v4 }
 0x126   : > { %v269_v8 = vpop.f32.mrf.mxu0  ;;  %v282_v9 = vpop.f32.mrf.mxu1 }
 0x127   : > { %v293_v7 = vpop.f32.mrf.mxu2 }
 0x12f   : > { %v295_v10 = vpop.f32.mrf.mxu2  ;;  %v332_v11 = vpop.f32.mrf.mxu0 }
 0x130   : > { %v345_v12 = vpop.f32.mrf.mxu1  ;;  %v333_v13 = vadd.f32 %v332_v11, %v280_v5  ;;  %v406_v15 = vpop.f32.mrf.mxu3 }
 0x131   : > { %v346_v14 = vadd.f32 %v345_v12, %v293_v7  ;;  %v895_v10 = vpop.permute.xlu2 %894 }
 0x132   : > { %v424_v16 = vadd.f32 %v406_v15, %v333_v13 }
 0x137   : > { %v393_v17 = vpop.f32.mrf.mxu2  ;;  %v334_v18 = vpop.f32.mrf.mxu0 }
 0x138   : > { %v347_v19 = vpop.f32.mrf.mxu1  ;;  %v408_v20 = vpop.f32.mrf.mxu3  ;;  %v423_v49 = vadd.f32 %v393_v17, %v320_v6 }
 0x13f   : > { %v395_v21 = vpop.f32.mrf.mxu2  ;;  %v419_v22 = vpop.f32.mrf.mxu0 }
 0x140   : > { %v470_v23 = vpop.f32.mrf.mxu1  ;;  %v496_v24 = vpop.f32.mrf.mxu3  ;;  %v425_v54 = vadd.f32 %v419_v22, %v346_v14 }
 0x141   : > { %v500_v50 = vadd.f32 %v470_v23, %v423_v49 }
 0x142   : > { %v502_v61 = vadd.f32 %v496_v24, %v425_v54 }
 0x147   : > { %v483_v25 = vpop.f32.mrf.mxu2  ;;  %v421_v26 = vpop.f32.mrf.mxu0 }
 0x148   : > { %v472_v27 = vpop.f32.mrf.mxu1  ;;  %v498_v28 = vpop.f32.mrf.mxu3  ;;  %v501_v51 = vadd.f32 %v483_v25, %v424_v16 }
 0x14f   : > { %v485_v29 = vpop.f32.mrf.mxu2  ;;  %v547_v30 = vpop.f32.mrf.mxu0 }
 0x150   : > { %v560_v31 = vpop.f32.mrf.mxu1  ;;  %v624_v32 = vpop.f32.mrf.mxu3  ;;  %v577_v52 = vadd.f32 %v547_v30, %v500_v50 }
 0x151   : > { %v578_v55 = vadd.f32 %v560_v31, %v501_v51 }
 0x152   : > { %v654_v60 = vadd.f32 %v624_v32, %v577_v52 }
 0x157   : > { %v573_v33 = vpop.f32.mrf.mxu2  ;;  %v549_v34 = vpop.f32.mrf.mxu0 }
 0x158   : > { %v562_v35 = vpop.f32.mrf.mxu1  ;;  %v626_v36 = vpop.f32.mrf.mxu3  ;;  %v579_v63 = vadd.f32 %v573_v33, %v502_v61 }
 0x15f   : > { %v575_v37 = vpop.f32.mrf.mxu2  ;;  %v637_v38 = vpop.f32.mrf.mxu0 }
 0x160   : > { %v650_v39 = vpop.f32.mrf.mxu1  ;;  %v714_v40 = vpop.f32.mrf.mxu3  ;;  %v655_v59 = vadd.f32 %v637_v38, %v578_v55 }
 0x161   : > { %v656_v3 = vadd.f32 %v650_v39, %v579_v63 }
 0x162   : > { %v732_v0 = vadd.f32 %v714_v40, %v655_v59 }
 0x167   : > { %v701_v41 = vpop.f32.mrf.mxu2  ;;  %v639_v42 = vpop.f32.mrf.mxu0 }
 0x168   : > { %v652_v43 = vpop.f32.mrf.mxu1  ;;  %v716_v44 = vpop.f32.mrf.mxu3  ;;  %v731_v62 = vadd.f32 %v701_v41, %v654_v60 }
 0x16f   : > { %v703_v45 = vpop.f32.mrf.mxu2  ;;  %v727_v46 = vpop.f32.mrf.mxu0 }
 0x170   : > { %v778_v47 = vpop.f32.mrf.mxu1  ;;  %v804_v48 = vpop.f32.mrf.mxu3  ;;  %v733_v8 = vadd.f32 %v727_v46, %v656_v3 }
 0x171   : > { %v808_v1 = vadd.f32 %v778_v47, %v731_v62 }
 0x172   : > { %v810_v14 = vadd.f32 %v804_v48, %v733_v8 }
 0x177   : > { %v791_v53 = vpop.f32.mrf.mxu2  ;;  %v729_v56 = vpop.f32.mrf.mxu0 }
 0x178   : > { %v780_v57 = vpop.f32.mrf.mxu1  ;;  %v806_v58 = vpop.f32.mrf.mxu3  ;;  %v809_v4 = vadd.f32 %v791_v53, %v732_v0 }
 0x17f   : > { %v793_v2 = vpop.f32.mrf.mxu2  ;;  %v855_v5 = vpop.f32.mrf.mxu0 }
 0x180   : > { %v885_v6 = vadd.f32 %v855_v5, %v808_v1  ;;  %v868_v7 = vpop.f32.mrf.mxu1 }
 0x181   : > { %v886_v9 = vadd.f32 %v868_v7, %v809_v4 }
 0x182   : > { %v888_v11 = vmul.f32 0.16666667, %v885_v6 }
 0x183   : > { %v889_v12 = vmul.f32 0.16666667, %v886_v9 }
 0x184   : > { %v897_v13 = vadd.f32 %v895_v10, %v888_v11 }
 0x185   : > { %v898_v15 = vadd.f32 %v895_v10, %v889_v12 }
 0x186   : > { %900 = vst [vmem:[%s203_s4] sm:$0xff] %v897_v13 }
 0x187   : > { %v881_v16 = vpop.f32.mrf.mxu2  ;;  %901 = vst [vmem:[%s203_s4 + $0x8] sm:$0xff] %v898_v15  ;;  %v857_v18 = vpop.f32.mrf.mxu0 }
 0x188   : > { %v887_v17 = vadd.f32 %v881_v16, %v810_v14  ;;  %v870_v19 = vpop.f32.mrf.mxu1 }
 0x18a   : > { %v890_v20 = vmul.f32 0.16666667, %v887_v17 }
 0x18c   : > { %v899_v21 = vadd.f32 %v895_v10, %v890_v20 }
 0x18e   : > { %902 = vst [vmem:[%s203_s4 + $0x10] sm:$0xff] %v899_v21 }
 0x18f   : > { %v883_v22 = vpop.f32.mrf.mxu2 }
 0x190   : > { %1165 = shalt.err (!%p1162_p5)
}
 0x191   : > { %1072 = dma.vmem_to_hbm [thread:$0]  (%p1287_p4), %s920_s5, 384, %s922_s15, %s904_s6  }
 0x192 PF: > { %p1078_p6 = scmp.ge.s32.totalorder %s1216_s17, 2  ;;  %s933_s21 = sand.u32 1, %s1196_s12  }
 0x193   : > { %s934_s23 = scalar_lea.sflag [#allocation3], %s933_s21 }
 0x194   : > { %p1075_p7 = pnand %p1078_p6, %p1294_p8 }
 0x196   : > { %p1076_p9 = pneg %p1075_p7 }
 0x198   : > { %1191 = dma.done.wait (%p1076_p9), %s934_s23, 384  }
 0x199   : > { %1193 = vsyncadd (%p1076_p9), %s934_s23, 4294966912  ;;  %s16_s17 = sadd.s32 1, %s1216_s17   ;;  %s1473_s12 = smov %s1200_s13 }
 0x19a   : > { %p13_p10 = scmp.ge.s32.totalorder %s16_s17, 4   ;;  %s1474_s13 = smov %s1204_s14 }
 0x19b   : > { %s1475_s14 = smov %s1300_s25  ;;  %s1476_s15 = smov %s1212_s16 }
 0x19c   : > { %s1477_s16 = smov %s1479_s20  ;;  %15 = sbr.rel (!%p13_p10) target bundleno = 4 (0x4), region = 81 }
 0x1a1   :  { %940 = vsyncpa [#allocation3], 1 }
 0x1a2   :  { %942 = vsyncpa [#allocation3 + $0x1], 1 }

</bundles_post_ra>
